<compile_context>
chip_gen: v7x
topology: tpu7x:2x2x1
jax: 0.10.0
libtpu: 0.0.40
codegen_flags: <defaults>
</compile_context>

<pallas_src>
import jax
import jax.numpy as jnp
from jax.experimental import pallas as pl
from jax.experimental.pallas import tpu as pltpu


def residual_block_kernel(x_ref, band1_ref, bias1_ref, band2_ref, bias2_ref,
                          out_ref):
    # x_ref     : (1, H, W*C) f32   unpadded input rows (lane-dense)
    # band*_ref : (3, W*C, W*C)     banded conv weights (kw + Cin folded into K)
    # bias*_ref : (1, W*C) f32      per-lane bias (bias tiled over W)
    # out_ref   : (1, H, W*C)
    _, H, WC = x_ref.shape
    x = x_ref[0]                                   # (H, W*C) f32
    row = jax.lax.broadcasted_iota(jnp.int32, (H, WC), 0)

    def conv3x3(inp, band_ref, bias_ref):
        # inp: (H, W*C) in compute dtype; returns f32 (H, W*C).
        # r_kh[h, :] = contribution of input row h through vertical tap kh.
        r0 = jnp.dot(inp, band_ref[0], preferred_element_type=jnp.float32)
        r1 = jnp.dot(inp, band_ref[1], preferred_element_type=jnp.float32)
        r2 = jnp.dot(inp, band_ref[2], preferred_element_type=jnp.float32)
        # out[h] = r0[h-1] + r1[h] + r2[h+1], zero-padded at the top/bottom.
        c0 = jnp.where(row >= 1, pltpu.roll(r0, 1, axis=0), 0.0)
        c2 = jnp.where(row <= H - 2, pltpu.roll(r2, H - 1, axis=0), 0.0)
        return r1 + c0 + c2 + bias_ref[...]

    compute_dtype = band1_ref.dtype
    relu1 = jnp.maximum(conv3x3(x.astype(compute_dtype), band1_ref, bias1_ref),
                        0.0)
    acc2 = conv3x3(relu1.astype(compute_dtype), band2_ref, bias2_ref)
    out_ref[0] = jnp.maximum(x + acc2, 0.0).astype(out_ref.dtype)


def _banded_weights(w_oihw, W, dtype):
    """Fold the kw taps + input channels of a 3x3 conv into banded matrices.

    Returns bands of shape (3, W*C, W*C) with
      bands[kh, w_in*C + ci, w_out*C + co] = w[co, ci, kh, kw],  kw = w_in - w_out + 1
    (zero outside kw in {0,1,2}; the band edges implement the width-wise zero pad).
    """
    C = w_oihw.shape[0]
    w_t = jnp.transpose(w_oihw, (2, 3, 1, 0))            # (kh, kw, ci, co)
    wi = jnp.arange(W)
    kw = wi[:, None] - wi[None, :] + 1                   # (W_in, W_out)
    valid = (kw >= 0) & (kw <= 2)
    kw_c = jnp.clip(kw, 0, 2)
    bands = w_t[:, kw_c, :, :]                           # (3, W_in, W_out, C, C)
    bands = jnp.where(valid[None, :, :, None, None], bands, 0.0)
    bands = jnp.transpose(bands, (0, 1, 3, 2, 4)).reshape(3, W * C, W * C)
    return bands.astype(dtype)


def residual_block(x_nchw, w1, b1, w2, b2, *, compute_dtype=jnp.bfloat16):
    """x_nchw: (B, C, H, W) f32; w*: (C, C, 3, 3) OIHW; b*: (C,). Returns NCHW."""
    B, C, H, W = x_nchw.shape
    WC = W * C

    # NCHW -> lane-dense (B, H, W*C) rows.  (Transposes only exist because the
    # module's API is NCHW; no jnp.pad pass is needed anymore.)
    x_rows = jnp.transpose(x_nchw, (0, 2, 3, 1)).reshape(B, H, WC)

    band1 = _banded_weights(w1, W, compute_dtype)
    band2 = _banded_weights(w2, W, compute_dtype)
    bias1 = jnp.tile(b1, W).reshape(1, WC).astype(jnp.float32)
    bias2 = jnp.tile(b2, W).reshape(1, WC).astype(jnp.float32)

    out_rows = pl.pallas_call(
        residual_block_kernel,
        out_shape=jax.ShapeDtypeStruct((B, H, WC), x_nchw.dtype),
        grid_spec=pltpu.PrefetchScalarGridSpec(
            num_scalar_prefetch=0,
            grid=(B,),
            in_specs=[
                pl.BlockSpec((1, H, WC), lambda b: (b, 0, 0)),
                pl.BlockSpec((3, WC, WC), lambda b: (0, 0, 0)),
                pl.BlockSpec((1, WC), lambda b: (0, 0)),
                pl.BlockSpec((3, WC, WC), lambda b: (0, 0, 0)),
                pl.BlockSpec((1, WC), lambda b: (0, 0)),
            ],
            out_specs=pl.BlockSpec((1, H, WC), lambda b: (b, 0, 0)),
        ),
        compiler_params=pltpu.CompilerParams(
            dimension_semantics=("parallel",),   # one image per TC on v7x
            vmem_limit_bytes=32 * 1024 * 1024,   # explicit bound (v7x-safe)
        ),
    )(x_rows, band1, bias1, band2, bias2)

    return jnp.transpose(out_rows.reshape(B, H, W, C), (0, 3, 1, 2))


def residual_block_reference(x, w1, b1, w2, b2):
    """Pure-JAX NCHW reference matching the PyTorch module."""
    dn = jax.lax.conv_dimension_numbers(x.shape, w1.shape,
                                        ("NCHW", "OIHW", "NCHW"))
    c1 = jax.lax.conv_general_dilated(
        x, w1, (1, 1), ((1, 1), (1, 1)), dimension_numbers=dn)
    c1 = c1 + b1[None, :, None, None]
    r1 = jnp.maximum(c1, 0.0)
    c2 = jax.lax.conv_general_dilated(
        r1, w2, (1, 1), ((1, 1), (1, 1)), dimension_numbers=dn)
    c2 = c2 + b2[None, :, None, None]
    return jnp.maximum(x + c2, 0.0)


if __name__ == "__main__":
    B, C, H, W = 2, 4, 16, 16

    key = jax.random.PRNGKey(0)
    kx, kw1, kb1, kw2, kb2 = jax.random.split(key, 5)

    bound = 1.0 / jnp.sqrt(C * 3.0 * 3.0)
    x = jax.random.normal(kx, (B, C, H, W), dtype=jnp.float32)
    w1 = jax.random.uniform(kw1, (C, C, 3, 3), jnp.float32, -bound, bound)
    b1 = jax.random.uniform(kb1, (C,), jnp.float32, -bound, bound)
    w2 = jax.random.uniform(kw2, (C, C, 3, 3), jnp.float32, -bound, bound)
    b2 = jax.random.uniform(kb2, (C,), jnp.float32, -bound, bound)

    ref = residual_block_reference(x, w1, b1, w2, b2)

    # Structural correctness check with f32 matmuls (tight tolerance).
    out_f32 = jax.block_until_ready(
        residual_block(x, w1, b1, w2, b2, compute_dtype=jnp.float32))
    assert out_f32.shape == (B, C, H, W)
    assert jnp.allclose(out_f32, ref, atol=1e-4, rtol=1e-4), "f32 mismatch vs reference"

    # Default bf16 MXU path (f32 accumulation) -> relaxed tolerance.
    out = jax.block_until_ready(residual_block(x, w1, b1, w2, b2))
    assert out.shape == (B, C, H, W)
    assert jnp.allclose(out, ref, atol=2e-2, rtol=2e-2), "bf16 mismatch vs reference"

    print("KERNEL_OK")
</pallas_src>

<mosaic_0001>
module attributes {stable_mosaic.version = 11 : i64} {
  func.func @residual_block_kernel(%arg0: i32, %arg1: memref<1x16x64xf32, #tpu.memory_space<vmem>>, %arg2: memref<3x64x64xf32, #tpu.memory_space<vmem>>, %arg3: memref<1x64xf32, #tpu.memory_space<vmem>>, %arg4: memref<3x64x64xf32, #tpu.memory_space<vmem>>, %arg5: memref<1x64xf32, #tpu.memory_space<vmem>>, %arg6: memref<1x16x64xf32, #tpu.memory_space<vmem>>) attributes {dimension_semantics = [#tpu.dimension_semantics<parallel>], iteration_bounds = array<i64: 2>, scalar_prefetch = 0 : i64, scratch_operands = 0 : i64, tpu.core_type = #tpu.core_type<tc>, window_params = [{transform_indices = @transform_0, window_bounds = array<i64: 1, 16, 64>}, {pipeline_mode = #tpu.pipeline_mode<synchronous>, transform_indices = @transform_1, window_bounds = array<i64: 3, 64, 64>}, {pipeline_mode = #tpu.pipeline_mode<synchronous>, transform_indices = @transform_2, window_bounds = array<i64: 1, 64>}, {pipeline_mode = #tpu.pipeline_mode<synchronous>, transform_indices = @transform_3, window_bounds = array<i64: 3, 64, 64>}, {pipeline_mode = #tpu.pipeline_mode<synchronous>, transform_indices = @transform_4, window_bounds = array<i64: 1, 64>}, {transform_indices = @transform_5, window_bounds = array<i64: 1, 16, 64>}]} {
    %c0 = arith.constant 0 : index
    %c0_0 = arith.constant 0 : index
    %c0_1 = arith.constant 0 : index
    %0 = vector.load %arg1[%c0, %c0_0, %c0_1] : memref<1x16x64xf32, #tpu.memory_space<vmem>>, vector<1x16x64xf32>
    %1 = vector.shape_cast %0 : vector<1x16x64xf32> to vector<16x64xf32>
    %2 = tpu.iota {dimensions = array<i32: 0>} : vector<16x64xi32>
    %c0_2 = arith.constant 0 : index
    %c0_3 = arith.constant 0 : index
    %c0_4 = arith.constant 0 : index
    %3 = vector.load %arg2[%c0_2, %c0_3, %c0_4] : memref<3x64x64xf32, #tpu.memory_space<vmem>>, vector<1x64x64xf32>
    %4 = vector.shape_cast %3 : vector<1x64x64xf32> to vector<64x64xf32>
    %cst = arith.constant dense<0.000000e+00> : vector<16x64xf32>
    %5 = tpu.matmul %1, %4, %cst {dimension_numbers = #tpu.dot_dimension_numbers<[1], [0], [0], [1], [0, 0, 1, 1], [], []>} : vector<16x64xf32>, vector<64x64xf32>, vector<16x64xf32> -> vector<16x64xf32>
    %c1 = arith.constant 1 : index
    %c0_5 = arith.constant 0 : index
    %c0_6 = arith.constant 0 : index
    %6 = vector.load %arg2[%c1, %c0_5, %c0_6] : memref<3x64x64xf32, #tpu.memory_space<vmem>>, vector<1x64x64xf32>
    %7 = vector.shape_cast %6 : vector<1x64x64xf32> to vector<64x64xf32>
    %cst_7 = arith.constant dense<0.000000e+00> : vector<16x64xf32>
    %8 = tpu.matmul %1, %7, %cst_7 {dimension_numbers = #tpu.dot_dimension_numbers<[1], [0], [0], [1], [0, 0, 1, 1], [], []>} : vector<16x64xf32>, vector<64x64xf32>, vector<16x64xf32> -> vector<16x64xf32>
    %c2 = arith.constant 2 : index
    %c0_8 = arith.constant 0 : index
    %c0_9 = arith.constant 0 : index
    %9 = vector.load %arg2[%c2, %c0_8, %c0_9] : memref<3x64x64xf32, #tpu.memory_space<vmem>>, vector<1x64x64xf32>
    %10 = vector.shape_cast %9 : vector<1x64x64xf32> to vector<64x64xf32>
    %cst_10 = arith.constant dense<0.000000e+00> : vector<16x64xf32>
    %11 = tpu.matmul %1, %10, %cst_10 {dimension_numbers = #tpu.dot_dimension_numbers<[1], [0], [0], [1], [0, 0, 1, 1], [], []>} : vector<16x64xf32>, vector<64x64xf32>, vector<16x64xf32> -> vector<16x64xf32>
    %c1_i32 = arith.constant 1 : i32
    %12 = vector.broadcast %c1_i32 : i32 to vector<16x64xi32>
    %13 = arith.cmpi sge, %2, %12 : vector<16x64xi32>
    %c1_i32_11 = arith.constant 1 : i32
    %14 = tpu.dynamic_rotate %5 by %c1_i32_11 dim 0 : vector<16x64xf32>, i32 -> vector<16x64xf32>
    %cst_12 = arith.constant 0.000000e+00 : f32
    %15 = vector.broadcast %cst_12 : f32 to vector<16x64xf32>
    %16 = arith.select %13, %14, %15 : vector<16x64xi1>, vector<16x64xf32>
    %c14_i32 = arith.constant 14 : i32
    %17 = vector.broadcast %c14_i32 : i32 to vector<16x64xi32>
    %18 = arith.cmpi sle, %2, %17 : vector<16x64xi32>
    %c15_i32 = arith.constant 15 : i32
    %19 = tpu.dynamic_rotate %11 by %c15_i32 dim 0 : vector<16x64xf32>, i32 -> vector<16x64xf32>
    %cst_13 = arith.constant 0.000000e+00 : f32
    %20 = vector.broadcast %cst_13 : f32 to vector<16x64xf32>
    %21 = arith.select %18, %19, %20 : vector<16x64xi1>, vector<16x64xf32>
    %22 = arith.addf %8, %16 : vector<16x64xf32>
    %23 = arith.addf %22, %21 : vector<16x64xf32>
    %c0_14 = arith.constant 0 : index
    %c0_15 = arith.constant 0 : index
    %24 = vector.load %arg3[%c0_14, %c0_15] : memref<1x64xf32, #tpu.memory_space<vmem>>, vector<1x64xf32>
    %25 = vector.broadcast %24 : vector<1x64xf32> to vector<16x64xf32>
    %26 = arith.addf %23, %25 : vector<16x64xf32>
    %cst_16 = arith.constant 0.000000e+00 : f32
    %27 = vector.broadcast %cst_16 : f32 to vector<16x64xf32>
    %28 = arith.maximumf %26, %27 : vector<16x64xf32>
    %c0_17 = arith.constant 0 : index
    %c0_18 = arith.constant 0 : index
    %c0_19 = arith.constant 0 : index
    %29 = vector.load %arg4[%c0_17, %c0_18, %c0_19] : memref<3x64x64xf32, #tpu.memory_space<vmem>>, vector<1x64x64xf32>
    %30 = vector.shape_cast %29 : vector<1x64x64xf32> to vector<64x64xf32>
    %cst_20 = arith.constant dense<0.000000e+00> : vector<16x64xf32>
    %31 = tpu.matmul %28, %30, %cst_20 {dimension_numbers = #tpu.dot_dimension_numbers<[1], [0], [0], [1], [0, 0, 1, 1], [], []>} : vector<16x64xf32>, vector<64x64xf32>, vector<16x64xf32> -> vector<16x64xf32>
    %c1_21 = arith.constant 1 : index
    %c0_22 = arith.constant 0 : index
    %c0_23 = arith.constant 0 : index
    %32 = vector.load %arg4[%c1_21, %c0_22, %c0_23] : memref<3x64x64xf32, #tpu.memory_space<vmem>>, vector<1x64x64xf32>
    %33 = vector.shape_cast %32 : vector<1x64x64xf32> to vector<64x64xf32>
    %cst_24 = arith.constant dense<0.000000e+00> : vector<16x64xf32>
    %34 = tpu.matmul %28, %33, %cst_24 {dimension_numbers = #tpu.dot_dimension_numbers<[1], [0], [0], [1], [0, 0, 1, 1], [], []>} : vector<16x64xf32>, vector<64x64xf32>, vector<16x64xf32> -> vector<16x64xf32>
    %c2_25 = arith.constant 2 : index
    %c0_26 = arith.constant 0 : index
    %c0_27 = arith.constant 0 : index
    %35 = vector.load %arg4[%c2_25, %c0_26, %c0_27] : memref<3x64x64xf32, #tpu.memory_space<vmem>>, vector<1x64x64xf32>
    %36 = vector.shape_cast %35 : vector<1x64x64xf32> to vector<64x64xf32>
    %cst_28 = arith.constant dense<0.000000e+00> : vector<16x64xf32>
    %37 = tpu.matmul %28, %36, %cst_28 {dimension_numbers = #tpu.dot_dimension_numbers<[1], [0], [0], [1], [0, 0, 1, 1], [], []>} : vector<16x64xf32>, vector<64x64xf32>, vector<16x64xf32> -> vector<16x64xf32>
    %c1_i32_29 = arith.constant 1 : i32
    %38 = vector.broadcast %c1_i32_29 : i32 to vector<16x64xi32>
    %39 = arith.cmpi sge, %2, %38 : vector<16x64xi32>
    %c1_i32_30 = arith.constant 1 : i32
    %40 = tpu.dynamic_rotate %31 by %c1_i32_30 dim 0 : vector<16x64xf32>, i32 -> vector<16x64xf32>
    %cst_31 = arith.constant 0.000000e+00 : f32
    %41 = vector.broadcast %cst_31 : f32 to vector<16x64xf32>
    %42 = arith.select %39, %40, %41 : vector<16x64xi1>, vector<16x64xf32>
    %c14_i32_32 = arith.constant 14 : i32
    %43 = vector.broadcast %c14_i32_32 : i32 to vector<16x64xi32>
    %44 = arith.cmpi sle, %2, %43 : vector<16x64xi32>
    %c15_i32_33 = arith.constant 15 : i32
    %45 = tpu.dynamic_rotate %37 by %c15_i32_33 dim 0 : vector<16x64xf32>, i32 -> vector<16x64xf32>
    %cst_34 = arith.constant 0.000000e+00 : f32
    %46 = vector.broadcast %cst_34 : f32 to vector<16x64xf32>
    %47 = arith.select %44, %45, %46 : vector<16x64xi1>, vector<16x64xf32>
    %48 = arith.addf %34, %42 : vector<16x64xf32>
    %49 = arith.addf %48, %47 : vector<16x64xf32>
    %c0_35 = arith.constant 0 : index
    %c0_36 = arith.constant 0 : index
    %50 = vector.load %arg5[%c0_35, %c0_36] : memref<1x64xf32, #tpu.memory_space<vmem>>, vector<1x64xf32>
    %51 = vector.broadcast %50 : vector<1x64xf32> to vector<16x64xf32>
    %52 = arith.addf %49, %51 : vector<16x64xf32>
    %53 = arith.addf %1, %52 : vector<16x64xf32>
    %cst_37 = arith.constant 0.000000e+00 : f32
    %54 = vector.broadcast %cst_37 : f32 to vector<16x64xf32>
    %55 = arith.maximumf %53, %54 : vector<16x64xf32>
    %c0_38 = arith.constant 0 : index
    %c0_39 = arith.constant 0 : index
    %c0_40 = arith.constant 0 : index
    %56 = vector.load %arg6[%c0_38, %c0_39, %c0_40] : memref<1x16x64xf32, #tpu.memory_space<vmem>>, vector<1x16x64xf32>
    %57 = vector.shape_cast %56 : vector<1x16x64xf32> to vector<16x64xf32>
    %58 = vector.shape_cast %55 : vector<16x64xf32> to vector<1x16x64xf32>
    tpu.vector_store %arg6[%c0_38, %c0_39, %c0_40], %58 {strides = array<i32>} : memref<1x16x64xf32, #tpu.memory_space<vmem>>, vector<1x16x64xf32>,
    return
  }
  func.func @transform_0(%arg0: i32) -> (i32, i32, i32) {
    %c0_i32 = arith.constant 0 : i32
    %c0_i32_0 = arith.constant 0 : i32
    %c0_i32_1 = arith.constant 0 : i32
    return %arg0, %c0_i32, %c0_i32_0 : i32, i32, i32
  }
  func.func @transform_1(%arg0: i32) -> (i32, i32, i32) {
    %c0_i32 = arith.constant 0 : i32
    %c0_i32_0 = arith.constant 0 : i32
    %c0_i32_1 = arith.constant 0 : i32
    %c0_i32_2 = arith.constant 0 : i32
    return %c0_i32, %c0_i32_0, %c0_i32_1 : i32, i32, i32
  }
  func.func @transform_2(%arg0: i32) -> (i32, i32) {
    %c0_i32 = arith.constant 0 : i32
    %c0_i32_0 = arith.constant 0 : i32
    %c0_i32_1 = arith.constant 0 : i32
    return %c0_i32, %c0_i32_0 : i32, i32
  }
  func.func @transform_3(%arg0: i32) -> (i32, i32, i32) {
    %c0_i32 = arith.constant 0 : i32
    %c0_i32_0 = arith.constant 0 : i32
    %c0_i32_1 = arith.constant 0 : i32
    %c0_i32_2 = arith.constant 0 : i32
    return %c0_i32, %c0_i32_0, %c0_i32_1 : i32, i32, i32
  }
  func.func @transform_4(%arg0: i32) -> (i32, i32) {
    %c0_i32 = arith.constant 0 : i32
    %c0_i32_0 = arith.constant 0 : i32
    %c0_i32_1 = arith.constant 0 : i32
    return %c0_i32, %c0_i32_0 : i32, i32
  }
  func.func @transform_5(%arg0: i32) -> (i32, i32, i32) {
    %c0_i32 = arith.constant 0 : i32
    %c0_i32_0 = arith.constant 0 : i32
    %c0_i32_1 = arith.constant 0 : i32
    return %arg0, %c0_i32, %c0_i32_0 : i32, i32, i32
  }
}

</mosaic_0001>

<bundles_post_ra>
// kernel: tpu_custom_call.1
= control target key start
LH: loop header
LB: loop body
LE: loop exit
PB: predicated region body
PF: predicated region fallthrough
CT: control target
= control target key end

     0   :  { %10 = vsyncpa [#allocation3], 0  ;;  %s1840_s0 = inlined_call_operand.hbm [shape: f32[2,16,64], index: 0, kind: input, shape index: {}]   ;;  %s1841_s1 = inlined_call_operand.hbm [shape: f32[3,64,64], index: 1, kind: input, shape index: {}]   ;;  %s1842_s2 = inlined_call_operand.vmem [shape: f32[1,64], index: 2, kind: input, shape index: {}]   ;;  %s1843_s3 = inlined_call_operand.hbm [shape: f32[3,64,64], index: 3, kind: input, shape index: {}]   ;;  %s1844_s4 = inlined_call_operand.vmem [shape: f32[1,64], index: 4, kind: input, shape index: {}]   ;;  %s1845_s5 = inlined_call_operand.hbm [shape: f32[2,16,64], index: 5, kind: output, shape index: {}]  }
   0x1   :  { %12 = vsyncpa [#allocation3 + $0x1], 0 }
   0x2   :  { %13 = vsyncpa [#allocation6], 0 }
   0x3   :  { %14 = vsyncpa [#allocation4], 0 }
   0x4   :  { %16 = vsyncpa [#allocation4 + $0x1], 0  ;;  %s1529_s18 = smov 0   ;;  %s1531_s19 = smov 0  }
   0x5   :  { %s1533_s20 = smov 0   ;;  %s1535_s21 = smov 0  }
   0x6 LB: > { %s1550_s22 = sadd.s32 4294967295, %s1489_s21   ;;  %s958_s23 = sadd.s32 4294967294, %s1489_s21   ;;  %s1489_s21 = sphi %s1535_s21, %s1865_s21   ;;  %s1485_s20 = sphi %s1533_s20, %s1864_s20   ;;  %s1481_s19 = sphi %s1531_s19, %s1863_s19   ;;  %s1477_s18 = sphi %s1529_s18, %s1862_s18  }
   0x7   : > { %p42_p0 = scmp.ne.s32.totalorder %s1481_s19, %s1477_s18  ;;  %p1846_p1 = scmp.eq.s32.totalorder %s1550_s22, 0 }
   0x8   : > { %p156_p3 = scmp.eq.s32.totalorder %s958_s23, 1  ;;  %p959_p5 = scmp.ge.s32.totalorder %s1489_s21, 1 }
   0x9   : > { %p1559_p4 = por %p1846_p1, %p42_p0  ;;  %p163_p7 = scmp.lt.s32.totalorder %s1489_s21, 3 }
   0xa   : > { %p1564_p6 = por %p156_p3, %p42_p0  ;;  %s1491_s27 = smov [#allocation5]  }
   0xb   : > { %s1849_s24 = scalar_select %p1559_p4, 1, 0 }
   0xc   : > { %s1850_s25 = scalar_select %p1564_p6, 1, 0 }
   0xd   : > { %p1569_p8 = pnand %p959_p5, %p163_p7  ;;  %s175_s28 = sshll.u32 %s1491_s27, 4  ;;  %s1573_s28 = int_to_ptr.vmem [resolvable:$true] %s175_s28 }
   0xe   : > { %s1492_s30 = smov [#allocation7]   ;;  %s1333_s9 = scalar_lea.hbm %s1841_s1, 3072 }
   0xf   : > { %p1274_p9 = pneg %p1569_p8  ;;  %s191_s6 = sshll.u32 %s1492_s30, 4  ;;  %s1584_s6 = int_to_ptr.vmem [resolvable:$true] %s191_s6 }
  0x10   : > { %p1334_p12 = scmp.ne.s32.totalorder %s1841_s1, %s1333_s9  ;;  %p1340_p5 = scmp.lt.u32.totalorder %s1333_s9, %s1841_s1 }
  0x11   : > { %p1580_p11 = pnand %p1274_p9, %p1846_p1 }
  0x13   : > { %p1335_p13 = pneg %p1580_p11 }
  0x15   : > { %p1336_p0 = pnand %p1335_p13, %p1334_p12 }
  0x17   : > { %p1337_p3 = pneg %p1336_p0 }
  0x19   : > { %p1342_p7 = pnand %p1340_p5, %p1337_p3 }
  0x1b   : > { %1345 = shalt.err (!%p1342_p7)
}
  0x1c   : > { %s1346_s14 = scalar_lea.vmem %s1573_s28, 3072  ;;  %p1354_p2 = scmp.lt.s32.totalorder %s1573_s28, %s1573_s28 }
  0x1d   : > { %p1347_p9 = scmp.ne.s32.totalorder %s1573_s28, %s1346_s14  ;;  %p1355_p12 = scmp.lt.s32.totalorder %s1346_s14, %s1346_s14 }
  0x1f   : > { %p1349_p10 = pnand %p1347_p9, %p1335_p13  ;;  %p1356_p0 = por %p1355_p12, %p1354_p2 }
  0x21   : > { %p1350_p1 = pneg %p1349_p10 }
  0x23   : > { %p1357_p6 = pnand %p1356_p0, %p1350_p1 }
  0x25   : > { %1360 = shalt.err (!%p1357_p6)
}
  0x26   : > { %s1493_s15 = smov 128   ;;  %s1494_s16 = smov 8  }
  0x27   : > { %1277 = dma.hbm_to_vmem [thread:$0]  (!%p1580_p11), %s1841_s1, 3072, %s1573_s28, [#allocation6], %s1493_s15, %s1493_s15, %s1494_s16  }
  0x28   : > { %s1361_s7 = scalar_lea.hbm %s1843_s3, 3072 }
  0x29   : > { %p1362_p1 = scmp.ne.s32.totalorder %s1843_s3, %s1361_s7  ;;  %p1368_p10 = scmp.lt.u32.totalorder %s1361_s7, %s1843_s3 }
  0x2b   : > { %p1364_p2 = pnand %p1362_p1, %p1335_p13 }
  0x2d   : > { %p1365_p6 = pneg %p1364_p2 }
  0x2f   : > { %p1370_p3 = pnand %p1368_p10, %p1365_p6 }
  0x31   : > { %1373 = shalt.err (!%p1370_p3)
}
  0x32   : > { %s1374_s28 = scalar_lea.vmem %s1584_s6, 3072  ;;  %p1382_p12 = scmp.lt.s32.totalorder %s1584_s6, %s1584_s6 }
  0x33   : > { %p1375_p5 = scmp.ne.s32.totalorder %s1584_s6, %s1374_s28  ;;  %p1383_p0 = scmp.lt.s32.totalorder %s1374_s28, %s1374_s28 }
  0x35   : > { %p1377_p7 = pnand %p1375_p5, %p1335_p13  ;;  %p1384_p1 = por %p1383_p0, %p1382_p12 }
  0x37   : > { %p1378_p9 = pneg %p1377_p7 }
  0x39   : > { %p1385_p2 = pnand %p1384_p1, %p1378_p9 }
  0x3b   : > { %1388 = shalt.err (!%p1385_p2)
}
  0x3c   : > { %1280 = dma.hbm_to_vmem [thread:$0]  (!%p1580_p11), %s1843_s3, 3072, %s1584_s6, [#allocation6], %s1493_s15, %s1493_s15, %s1494_s16  }
  0x3d   : > { %s1645_s29 = sadd.s32 1, %s1489_s21   ;;  %s29_s14 = sadd.s32 1, %s1485_s20 }
  0x3e   : > { %s26_s17 = ssub.s32 %s1489_s21, %s1645_s29  ;;  %p36_p13 = scmp.ne.s32.totalorder %s1485_s20, %s1481_s19 }
  0x3f   : > { %p27_p6 = scmp.eq.s32.totalorder %s26_s17, 0  ;;  %p37_p10 = scmp.eq.s32.totalorder %s1489_s21, 0 }
  0x40   : > { %p1853_p3 = scmp.eq.s32.totalorder %s1550_s22, 1  ;;  %p1291_p7 = scmp.lt.s32.totalorder %s1489_s21, 2 }
  0x41   : > { %s1661_s27 = scalar_select %p27_p6, %s1485_s20, %s29_s14  }
  0x42   : > { %p1655_p5 = por %p1853_p3, %p36_p13  ;;  %p38_p9 = por %p37_p10, %p36_p13 }
  0x43   : > { %s208_s30 = sand.u32 1, %s1485_s20   ;;  %s990_s6 = sshll.u32 %s1489_s21, 8 }
  0x44   : > { %s1854_s23 = scalar_select %p1655_p5, 1, 0 }
  0x45   : > { %s963_s7 = sshll.u32 %s208_s30, 4  ;;  %s1668_s10 = scalar_lea.hbm %s1840_s0, %s990_s6 }
  0x46   : > { %s212_s11 = scalar_lea.vmem [#allocation2], %s963_s7  ;;  %p1672_p11 = pnand %p1291_p7, %p38_p9 }
  0x47   : > { %s219_s28 = sshll.u32 %s212_s11, 4  ;;  %s1676_s13 = scalar_lea.sflag [#allocation3], %s208_s30  ;;  %s1670_s28 = int_to_ptr.vmem [resolvable:$true] %s219_s28 }
  0x48   : > { %s1389_s14 = scalar_lea.hbm %s1668_s10, 256  ;;  %p1391_p0 = pneg %p1672_p11 }
  0x49   : > { %p1390_p12 = scmp.ne.s32.totalorder %s1668_s10, %s1389_s14  ;;  %s1394_s6 = scalar_lea.hbm %s1840_s0, 512 }
  0x4a   : > { %p1395_p13 = scmp.lt.u32.totalorder %s1668_s10, %s1840_s0  ;;  %p1396_p6 = scmp.lt.u32.totalorder %s1394_s6, %s1389_s14 }
  0x4b   : > { %p1392_p1 = pnand %p1391_p0, %p1390_p12  ;;  %p1398_p3 = scmp.lt.u32.totalorder %s1389_s14, %s1668_s10 }
  0x4c   : > { %p1397_p10 = por %p1396_p6, %p1395_p13 }
  0x4d   : > { %p1393_p2 = pneg %p1392_p1 }
  0x4e   : > { %p1399_p7 = por %p1398_p3, %p1397_p10 }
  0x50   : > { %p1400_p9 = pnand %p1399_p7, %p1393_p2 }
  0x52   : > { %1403 = shalt.err (!%p1400_p9)
}
  0x53   : > { %s1404_s30 = scalar_lea.vmem %s1670_s28, 256  ;;  %s1495_s11 = smov [#allocation2]  }
  0x54   : > { %p1405_p12 = scmp.ne.s32.totalorder %s1670_s28, %s1404_s30  ;;  %s1409_s17 = sshll.u32 %s1495_s11, 4  ;;  %s1410_s17 = int_to_ptr.vmem [resolvable:$false] %s1409_s17 }
  0x55   : > { %s1411_s7 = scalar_lea.vmem %s1410_s17, 512  ;;  %p1412_p4 = scmp.lt.s32.totalorder %s1670_s28, %s1410_s17 }
  0x56   : > { %p1407_p1 = pnand %p1405_p12, %p1391_p0  ;;  %p1413_p13 = scmp.lt.s32.totalorder %s1411_s7, %s1404_s30 }
  0x58   : > { %p1408_p5 = pneg %p1407_p1  ;;  %p1414_p6 = por %p1413_p13, %p1412_p4 }
  0x5a   : > { %p1415_p10 = pnand %p1414_p6, %p1408_p5 }
  0x5c   : > { %1418 = shalt.err (!%p1415_p10)
}
  0x5d   : > { %1284 = dma.hbm_to_vmem [thread:$0]  (!%p1672_p11), %s1668_s10, 256, %s1670_s28, %s1676_s13, %s1493_s15, %s1493_s15, %s1494_s16  }
  0x5e   : > { %231 = sbr.rel (%p1569_p8) target bundleno = 616 (0x268), region = 40  ;;  %s1710_s14 = sand.u32 (!%p1569_p8), 1, %s1481_s19  }
  0x5f   : > { %s967_s6 = sshll.u32 (!%p1569_p8), %s1710_s14, 4  ;;  %s234_s8 = scalar_lea.sflag (!%p1569_p8), [#allocation3], %s1710_s14 }
  0x60   : > { %s1716_s12 = scalar_lea.vmem (!%p1569_p8), [#allocation2], %s967_s6  ;;  %p1856_p4 = scmp.ne.s32.totalorder (!%p1569_p8), %s1849_s24, 0 }
  0x65   : > { %1464 = dma.done.wait (%p1856_p4), %s234_s8, 256  }
  0x66   : > { %1466 = vsyncadd (%p1856_p4), %s234_s8, 4294967040  ;;  %p1857_p5 = scmp.eq.s32.totalorder %s1550_s22, 0 }
  0x68   : > { %1468 = dma.done.wait (%p1857_p5), [#allocation6], 6144   ;;  %p1858_p8 = pmov %p1857_p5 }
  0x69   : > { %v277_v0 = vld [vmem:[#allocation5] sm:$0xff]  ;;  %v278_v1 = vld [vmem:[#allocation5 + $0x8] sm:$0xff]  ;;  %v279_v2 = vld [vmem:[#allocation5 + $0x10] sm:$0xff]  ;;  %vm285_vm0 = vcmask 523264   ;;  %s991_s10 = sshll.u32 %s1550_s22, 8  ;;  %s271_s28 = scalar_lea.vmem [#allocation8], %s967_s6 }
  0x6a   : > { %1470 = vsyncadd (%p1858_p8), [#allocation6], 4294961152  ;;  %v1166_v3 = vpack.c.bf16 %v278_v1, %v277_v0  ;;  %v280_v4 = vld [vmem:[#allocation5 + $0x18] sm:$0xff]  ;;  %v281_v6 = vld [vmem:[#allocation5 + $0x20] sm:$0xff]  ;;  %v274_v1 = vlaneseq  ;;  %s866_s13 = sshll.u32 %s271_s28, 4  ;;  %s1792_s11 = scalar_lea.hbm %s1845_s5, %s991_s10  ;;  %s1794_s13 = int_to_ptr.vmem [resolvable:$true] %s866_s13 }
  0x6b   : > { %v1170_v5 = vpack.c.bf16 %v280_v4, %v279_v2  ;;  %v282_v7 = vld [vmem:[#allocation5 + $0x28] sm:$0xff]  ;;  %v377_v8 = vld [vmem:[#allocation5 + $0x80] sm:$0xff]  ;;  %v379_v12 = vld [vmem:[#allocation5 + $0x90] sm:$0xff]  ;;  %s853_s22 = scalar_lea.sflag [#allocation4], %s1710_s14  ;;  %s1419_s17 = scalar_lea.vmem %s1794_s13, 256 }
  0x6c   : > { %1167 = vmatprep.subr.bf16.mxu0 %v1166_v3  ;;  %v378_v9 = vld [vmem:[#allocation5 + $0x88] sm:$0xff]  ;;  %v1727_v10 = vld [vmem:[%s1716_s12] sm:$0xff]  ;;  %v1174_v13 = vpack.c.bf16 %v282_v7, %v281_v6  ;;  %v380_v15 = vld [vmem:[#allocation5 + $0x98] sm:$0xff]  ;;  %v1744_v2 = vshrl.u32 %v274_v1, 7  ;;  %p1420_p11 = scmp.ne.s32.totalorder %s1794_s13, %s1419_s17  ;;  %p1859_p0 = scmp.ne.s32.totalorder %s1854_s23, 0 }
  0x6d   : > { %1169 = vmatpush3.bf16.msra.mxu0 %v1166_v3  ;;  %v1182_v11 = vpack.c.bf16 %v378_v9, %v377_v8  ;;  %1068 = vmatprep.mubr.msk.f32.mxu0 %vm285_vm0, %v1727_v10  ;;  %v283_v14 = vld [vmem:[#allocation5 + $0x30] sm:$0xff]  ;;  %v284_v16 = vld [vmem:[#allocation5 + $0x38] sm:$0xff]  ;;  %v1186_v17 = vpack.c.bf16 %v380_v15, %v379_v12  ;;  %v381_v18 = vld [vmem:[#allocation5 + $0xa0] sm:$0xff]  ;;  %s1496_s7 = smov [#allocation8]  }
  0x6e   : > { %1171 = vmatprep.subr.bf16.mxu0 %v1170_v5  ;;  %1087 = vmatprep.mubr.msk.f32.mxu1 %vm285_vm0, %v1727_v10  ;;  %v382_v19 = vld [vmem:[#allocation5 + $0xa8] sm:$0xff]  ;;  %v1178_v21 = vpack.c.bf16 %v284_v16, %v283_v14  ;;  %v383_v22 = vld [vmem:[#allocation5 + $0xb0] sm:$0xff]  ;;  %v384_v23 = vld [vmem:[#allocation5 + $0xb8] sm:$0xff]  ;;  %vm464_vm1 = vcmp.lt.s32.totalorder %v1744_v2, 1  ;;  %vm473_vm2 = vcmp.lt.s32.totalorder %v1744_v2, 7  ;;  %v276_v16 = vadd.s32 8, %v1744_v2  ;;  %p1421_p2 = pnand %p1420_p11, %p1859_p0 }
  0x6f   : > { %1183 = vmatprep.subr.bf16.mxu1 %v1182_v11  ;;  %v1190_v20 = vpack.c.bf16 %v382_v19, %v381_v18  ;;  %v368_v24 = vld [vmem:[#allocation5 + $0x40] sm:$0xff]  ;;  %v369_v25 = vld [vmem:[#allocation5 + $0x48] sm:$0xff]  ;;  %v1194_v26 = vpack.c.bf16 %v384_v23, %v383_v22  ;;  %v370_v28 = vld [vmem:[#allocation5 + $0x50] sm:$0xff]  ;;  %vm460_vm4 = vcmp.ge.s32.totalorder %v1744_v2, 1  ;;  %s1423_s6 = sshll.u32 %s1496_s7, 4  ;;  %s1424_s6 = int_to_ptr.vmem [resolvable:$false] %s1423_s6 }
  0x70   : > { %1185 = vmatpush3.bf16.msra.mxu1 %v1182_v11  ;;  %v1198_v27 = vpack.c.bf16 %v369_v25, %v368_v24  ;;  %v371_v29 = vld [vmem:[#allocation5 + $0x58] sm:$0xff]  ;;  %v372_v32 = vld [vmem:[#allocation5 + $0x60] sm:$0xff]  ;;  %v373_v33 = vld [vmem:[#allocation5 + $0x68] sm:$0xff]  ;;  %vm470_vm3 = vcmp.le.s32.totalorder %v276_v16, 14  ;;  %p1422_p3 = pneg %p1421_p2  ;;  %s1425_s8 = scalar_lea.vmem %s1424_s6, 512 }
  0x71   : > { %1173 = vmatpush3.bf16.msra.mxu0 %v1170_v5  ;;  %1187 = vmatprep.subr.bf16.mxu1 %v1186_v17  ;;  %v1734_v30 = vld [vmem:[%s1716_s12 + $0x8] sm:$0xff]  ;;  %v1202_v31 = vpack.c.bf16 %v371_v29, %v370_v28  ;;  %v1206_v34 = vpack.c.bf16 %v373_v33, %v372_v32  ;;  %v374_v35 = vld [vmem:[#allocation5 + $0x70] sm:$0xff]  ;;  %v566_v38 = vld [vmem:[#allocation7] sm:$0xff]  ;;  %p1426_p7 = scmp.lt.s32.totalorder %s1794_s13, %s1424_s6  ;;  %p1427_p9 = scmp.lt.s32.totalorder %s1425_s8, %s1419_s17 }
  0x72   : > { %1175 = vmatprep.subr.bf16.mxu0 %v1174_v13  ;;  %v375_v36 = vld [vmem:[#allocation5 + $0x78] sm:$0xff]  ;;  %v567_v39 = vld [vmem:[#allocation7 + $0x8] sm:$0xff]  ;;  %v665_v40 = vld [vmem:[#allocation7 + $0x80] sm:$0xff] }
  0x73   : > { %v1210_v37 = vpack.c.bf16 %v375_v36, %v374_v35  ;;  %v1214_v41 = vpack.c.bf16 %v567_v39, %v566_v38  ;;  %v666_v42 = vld [vmem:[#allocation7 + $0x88] sm:$0xff]  ;;  %v568_v44 = vld [vmem:[#allocation7 + $0x10] sm:$0xff]  ;;  %v569_v45 = vld [vmem:[#allocation7 + $0x18] sm:$0xff]  ;;  %p1428_p12 = por %p1427_p9, %p1426_p7 }
  0x74   : > { %1189 = vmatpush3.bf16.msra.mxu1 %v1186_v17  ;;  %v1230_v43 = vpack.c.bf16 %v666_v42, %v665_v40  ;;  %v667_v46 = vld [vmem:[#allocation7 + $0x90] sm:$0xff]  ;;  %v1218_v47 = vpack.c.bf16 %v569_v45, %v568_v44  ;;  %v668_v48 = vld [vmem:[#allocation7 + $0x98] sm:$0xff]  ;;  %v570_v50 = vld [vmem:[#allocation7 + $0x20] sm:$0xff] }
  0x75   : > { %1177 = vmatpush3.bf16.msra.mxu0 %v1174_v13  ;;  %1191 = vmatprep.subr.bf16.mxu1 %v1190_v20  ;;  %v1234_v49 = vpack.c.bf16 %v668_v48, %v667_v46  ;;  %v571_v51 = vld [vmem:[#allocation7 + $0x28] sm:$0xff]  ;;  %v669_v53 = vld [vmem:[#allocation7 + $0xa0] sm:$0xff]  ;;  %v572_v56 = vld [vmem:[#allocation7 + $0x30] sm:$0xff]  ;;  %p1429_p1 = pnand %p1428_p12, %p1422_p3 }
  0x76   : > { %1179 = vmatprep.subr.bf16.mxu0 %v1178_v21  ;;  %v1222_v52 = vpack.c.bf16 %v571_v51, %v570_v50  ;;  %v670_v54 = vld [vmem:[#allocation7 + $0xa8] sm:$0xff]  ;;  %v573_v57 = vld [vmem:[#allocation7 + $0x38] sm:$0xff]  ;;  %v671_v59 = vld [vmem:[#allocation7 + $0xb0] sm:$0xff] }
  0x77   : > { %v1238_v55 = vpack.c.bf16 %v670_v54, %v669_v53  ;;  %v1226_v58 = vpack.c.bf16 %v573_v57, %v572_v56  ;;  %v672_v60 = vld [vmem:[#allocation7 + $0xb8] sm:$0xff]  ;;  %v656_v62 = vld [vmem:[#allocation7 + $0x40] sm:$0xff]  ;;  %v657_v63 = vld [vmem:[#allocation7 + $0x48] sm:$0xff] }
  0x78   : > { %1193 = vmatpush3.bf16.msra.mxu1 %v1190_v20  ;;  %v1242_v61 = vpack.c.bf16 %v672_v60, %v671_v59  ;;  %v1246_v0 = vpack.c.bf16 %v657_v63, %v656_v62  ;;  %v977_v22 = vld [vmem:[%s1842_s2] ss:$0 sm:$0xff]  ;;  %v658_v28 = vld [vmem:[#allocation7 + $0x50] sm:$0xff]  ;;  %v659_v29 = vld [vmem:[#allocation7 + $0x58] sm:$0xff] }
  0x79   : > { %1181 = vmatpush3.bf16.msra.mxu0 %v1178_v21  ;;  %1195 = vmatprep.subr.bf16.mxu1 %v1194_v26  ;;  %v1250_v33 = vpack.c.bf16 %v659_v29, %v658_v28  ;;  %v661_v35 = vld [vmem:[#allocation7 + $0x68] sm:$0xff]  ;;  %v663_v38 = vld [vmem:[#allocation7 + $0x78] sm:$0xff]  ;;  %v984_v57 = vld [vmem:[%s1844_s4] ss:$0 sm:$0xff] }
  0x7a   : > { %1199 = vmatprep.subr.bf16.mxu0 %v1198_v27 }
  0x7c   : > { %1069 = vmatmul.mubr.msk.f32.vlgmr.msra.gmra.mrb[0].mxu0 %vm285_vm0, %v1734_v30  ;;  %1197 = vmatpush3.bf16.msra.mxu1 %v1194_v26 }
  0x7d   : > { %1201 = vmatpush3.bf16.msra.mxu0 %v1198_v27  ;;  %1106 = vmatprep.mubr.msk.f32.mxu0 %vm285_vm0, %v1727_v10 }
  0x7e   : > { %1203 = vmatprep.subr.bf16.mxu0 %v1202_v31  ;;  %1215 = vmatprep.subr.bf16.mxu1 %v1214_v41 }
  0x7f   : > { %1088 = vmatmul.mubr.msk.f32.vlgmr.msra.gmra.mrb[0].mxu1 %vm285_vm0, %v1734_v30 }
  0x80   : > { %1217 = vmatpush3.bf16.msra.mxu1 %v1214_v41 }
  0x81   : > { %1205 = vmatpush3.bf16.msra.mxu0 %v1202_v31  ;;  %1219 = vmatprep.subr.bf16.mxu1 %v1218_v47 }
  0x82   : > { %1207 = vmatprep.subr.bf16.mxu0 %v1206_v34 }
  0x84   : > { %1221 = vmatpush3.bf16.msra.mxu1 %v1218_v47 }
  0x85   : > { %1209 = vmatpush3.bf16.msra.mxu0 %v1206_v34  ;;  %1223 = vmatprep.subr.bf16.mxu1 %v1222_v52  ;;  %v660_v34 = vld [vmem:[#allocation7 + $0x60] sm:$0xff] }
  0x86   : > { %1211 = vmatprep.subr.bf16.mxu0 %v1210_v37  ;;  %v1254_v36 = vpack.c.bf16 %v661_v35, %v660_v34 }
  0x88   : > { %1225 = vmatpush3.bf16.msra.mxu1 %v1222_v52 }
  0x89   : > { %1213 = vmatpush3.bf16.msra.mxu0 %v1210_v37  ;;  %1227 = vmatprep.subr.bf16.mxu1 %v1226_v58  ;;  %v662_v37 = vld [vmem:[#allocation7 + $0x70] sm:$0xff] }
  0x8a   : > { %1231 = vmatprep.subr.bf16.mxu0 %v1230_v43  ;;  %v1258_v39 = vpack.c.bf16 %v663_v38, %v662_v37 }
  0x8c   : > { %1107 = vmatmul.mubr.msk.f32.vlgmr.msra.gmra.mrb[2].mxu0 %vm285_vm0, %v1734_v30  ;;  %1229 = vmatpush3.bf16.msra.mxu1 %v1226_v58 }
  0x8d   : > { %1233 = vmatpush3.bf16.msra.mxu0 %v1230_v43  ;;  %1247 = vmatprep.subr.bf16.mxu1 %v1246_v0 }
  0x8e   : > { %1235 = vmatprep.subr.bf16.mxu0 %v1234_v49 }
  0x91   : > { %1237 = vmatpush3.bf16.msra.mxu0 %v1234_v49 }
  0x92   : > { %1239 = vmatprep.subr.bf16.mxu0 %v1238_v55 }
  0x95   : > { %1241 = vmatpush3.bf16.msra.mxu0 %v1238_v55 }
  0x96   : > { %1243 = vmatprep.subr.bf16.mxu0 %v1242_v61 }
  0x99   : > { %1245 = vmatpush3.bf16.msra.mxu0 %v1242_v61 }
 0x14f   : > { %v1070_v3 = vpop.f32.mrb[0].mxu0 }
 0x150   : > { %v463_v4 = vrot.slane %v1070_v3, 7  ;;  %v358_v5 = vpop.f32.mrb[1].mxu0 }
 0x151   : > { %v462_v6 = vrot.slane %v358_v5, 7 }
 0x152   : > { %v1089_v7 = vpop.f32.mrb[0].mxu1 }
 0x153   : > { %v472_v8 = vrot.slane %v1089_v7, 1  ;;  %v451_v9 = vpop.f32.mrb[1].mxu1  ;;  %v465_v11 = vsel %vm464_vm1, %v462_v6, %v463_v4  ;;  %v466_v12 = vsel %vm464_vm1, %v463_v4, %v462_v6 }
 0x154   : > { %v471_v13 = vrot.slane %v451_v9, 1  ;;  %v467_v20 = vsel %vm460_vm4, %v466_v12, 0.0 }
 0x156   : > { %v475_v14 = vsel %vm473_vm2, %v472_v8, %v471_v13  ;;  %v474_v15 = vsel %vm473_vm2, %v471_v13, %v472_v8 }
 0x157   : > { %v477_v17 = vsel %vm470_vm3, %v475_v14, 0.0 }
 0x15f   : > { %v1108_v18 = vpop.f32.mrb[2].mxu0 }
 0x160   : > { %v550_v19 = vadd.f32 %v1108_v18, %v465_v11  ;;  %v544_v21 = vpop.f32.mrb[3].mxu0 }
 0x161   : > { %v545_v23 = vadd.f32 %v544_v21, %v467_v20 }
 0x162   : > { %v554_v24 = vadd.f32 %v550_v19, %v477_v17 }
 0x163   : > { %v553_v25 = vadd.f32 %v545_v23, %v474_v15 }
 0x164   : > { %v563_v26 = vadd.f32 %v977_v22, %v554_v24 }
 0x165   : > { %v562_v27 = vadd.f32 %v977_v22, %v553_v25 }
 0x166   : > { %v565_v32 = vmax.f32 %v563_v26, 0.0 }
 0x167   : > { %v564_v31 = vmax.f32 %v562_v27, 0.0 }
 0x169   : > { %1125 = vmatprep.mubr.msk.f32.mxu1 %vm285_vm0, %v564_v31  ;;  %1144 = vmatprep.mubr.msk.f32.mxu0 %vm285_vm0, %v564_v31 }
 0x16a   : > { %1126 = vmatmul.mubr.msk.f32.vlgmr.msra.gmra.mrb[2].mxu1 %vm285_vm0, %v565_v32  ;;  %1145 = vmatmul.mubr.msk.f32.vlgmr.msra.gmra.mrb[4].mxu0 %vm285_vm0, %v565_v32 }
 0x16b   : > { %1249 = vmatpush3.bf16.msra.mxu1 %v1246_v0  ;;  %1163 = vmatprep.mubr.msk.f32.mxu1 %vm285_vm0, %v564_v31 }
 0x16c   : > { %1251 = vmatprep.subr.bf16.mxu1 %v1250_v33 }
 0x16f   : > { %1253 = vmatpush3.bf16.msra.mxu1 %v1250_v33 }
 0x170   : > { %1255 = vmatprep.subr.bf16.mxu1 %v1254_v36 }
 0x173   : > { %1257 = vmatpush3.bf16.msra.mxu1 %v1254_v36 }
 0x174   : > { %1259 = vmatprep.subr.bf16.mxu1 %v1258_v39 }
 0x177   : > { %1261 = vmatpush3.bf16.msra.mxu1 %v1258_v39 }
 0x17a   : > { %1164 = vmatmul.mubr.msk.f32.vlgmr.msra.gmra.mrb[4].mxu1 %vm285_vm0, %v565_v32 }
 0x23d   : > { %v1127_v40 = vpop.f32.mrb[2].mxu1  ;;  %v1146_v41 = vpop.f32.mrb[4].mxu0 }
 0x23e   : > { %v749_v42 = vrot.slane %v1127_v40, 7  ;;  %v755_v43 = vrot.slane %v1146_v41, 1  ;;  %v646_v44 = vpop.f32.mrb[3].mxu1  ;;  %v739_v45 = vpop.f32.mrb[5].mxu0 }
 0x23f   : > { %v748_v46 = vrot.slane %v646_v44, 7  ;;  %v754_v47 = vrot.slane %v739_v45, 1 }
 0x241   : > { %v757_v48 = vsel %vm473_vm2, %v755_v43, %v754_v47  ;;  %v750_v49 = vsel %vm464_vm1, %v748_v46, %v749_v42  ;;  %v751_v50 = vsel %vm464_vm1, %v749_v42, %v748_v46  ;;  %v756_v51 = vsel %vm473_vm2, %v754_v47, %v755_v43 }
 0x242   : > { %v752_v54 = vsel %vm460_vm4, %v751_v50, 0.0  ;;  %v759_v56 = vsel %vm470_vm3, %v757_v48, 0.0 }
 0x24d   : > { %v1165_v52 = vpop.f32.mrb[4].mxu1 }
 0x24e   : > { %v832_v53 = vadd.f32 %v1165_v52, %v750_v49  ;;  %v826_v55 = vpop.f32.mrb[5].mxu1 }
 0x24f   : > { %v827_v58 = vadd.f32 %v826_v55, %v752_v54 }
 0x250   : > { %v836_v59 = vadd.f32 %v832_v53, %v759_v56 }
 0x251   : > { %v835_v60 = vadd.f32 %v827_v58, %v756_v51 }
 0x252   : > { %v845_v61 = vadd.f32 %v984_v57, %v836_v59 }
 0x253   : > { %v844_v62 = vadd.f32 %v984_v57, %v835_v60 }
 0x254   : > { %v847_v63 = vadd.f32 %v845_v61, %v1734_v30 }
 0x255   : > { %v846_v0 = vadd.f32 %v844_v62, %v1727_v10 }
 0x256   : > { %v849_v1 = vmax.f32 %v847_v63, 0.0 }
 0x257   : > { %v848_v2 = vmax.f32 %v846_v0, 0.0 }
 0x258   : > { %851 = vst.msk [vmem:[%s271_s28 + $0x8] sm:$0xff] %vm285_vm0, %v849_v1 }
 0x259   : > { %850 = vst.msk [vmem:[%s271_s28] sm:$0xff] %vm285_vm0, %v848_v2 }
 0x25a   : > { %1432 = shalt.err (!%p1429_p1)
}
 0x25b   : > { %s1433_s12 = scalar_lea.hbm %s1792_s11, 256  ;;  %s1437_s15 = scalar_lea.hbm %s1845_s5, 512 }
 0x25c   : > { %p1434_p13 = scmp.ne.s32.totalorder %s1792_s11, %s1433_s12  ;;  %p1438_p4 = scmp.lt.u32.totalorder %s1792_s11, %s1845_s5 }
 0x25d   : > { %p1439_p5 = scmp.lt.u32.totalorder %s1437_s15, %s1433_s12  ;;  %p1441_p11 = scmp.lt.u32.totalorder %s1433_s12, %s1792_s11 }
 0x25e   : > { %p1435_p6 = pnand %p1434_p13, %p1859_p0 }
 0x25f   : > { %p1440_p8 = por %p1439_p5, %p1438_p4 }
 0x260   : > { %p1436_p10 = pneg %p1435_p6 }
 0x261   : > { %p1442_p2 = por %p1441_p11, %p1440_p8 }
 0x263   : > { %p1443_p3 = pnand %p1442_p2, %p1436_p10 }
 0x265   : > { %1446 = shalt.err (!%p1443_p3)
}
 0x266   : > { %s1497_s28 = smov 128   ;;  %s1498_s9 = smov 8  }
 0x267   : > { %1272 = dma.vmem_to_hbm [thread:$0]  (%p1859_p0), %s1794_s13, 256, %s1792_s11, %s853_s22, %s1497_s28, %s1497_s28, %s1498_s9  }
 0x268 PF: > { %s881_s30 = sand.u32 1, %s1477_s18   ;;  %p1860_p7 = scmp.ne.s32.totalorder %s1850_s25, 0 }
 0x269   : > { %p1861_p9 = scmp.ge.s32.totalorder %s1489_s21, 2  ;;  %s882_s17 = scalar_lea.sflag [#allocation4], %s881_s30 }
 0x26b   : > { %p1286_p12 = pnand %p1861_p9, %p1860_p7 }
 0x26d   : > { %1472 = dma.done.wait (!%p1286_p12), %s882_s17, 256  }
 0x26e   : > { %1474 = vsyncadd (!%p1286_p12), %s882_s17, 4294967040  ;;  %p19_p1 = scmp.ge.s32.totalorder %s1645_s29, 4   ;;  %s1862_s18 = smov %s1481_s19 }
 0x26f   : > { %s1863_s19 = smov %s1485_s20  ;;  %s1864_s20 = smov %s1661_s27 }
 0x270   : > { %s1865_s21 = smov %s1645_s29  ;;  %21 = sbr.rel (!%p19_p1) target bundleno = 6 (0x6), region = 97 }
 0x277   :  { %887 = vsyncpa [#allocation3], 1 }
 0x278   :  { %889 = vsyncpa [#allocation3 + $0x1], 1 }
 0x279   :  { %890 = vsyncpa [#allocation6], 1 }
 0x27a   :  { %891 = vsyncpa [#allocation4], 1 }
 0x27b   :  { %893 = vsyncpa [#allocation4 + $0x1], 1 }

</bundles_post_ra>
